<compile_context>
chip_gen: v6e
topology: v6e:2x2x1
jax: 0.10.0
libtpu: 0.0.40
codegen_flags: <defaults>
</compile_context>

<pallas_src>
import jax
import jax.numpy as jnp
from jax.experimental import pallas as pl
from jax.experimental.pallas import tpu as pltpu

# Small shapes consistent with the module's forward.
BATCH = 2
SEQ = 8
D_MODEL = 32
D_FF = 64
DROPOUT_P = 0.1  # eval-mode forward -> identity; kept for documentation only


def ffn_kernel(x_ref, w1p_ref, w2p_ref, o_ref):
    """x_ref: (tile_m, d_model).  w1p_ref: (d_model+1, d_ff) = [w1 ; b1].
    w2p_ref: (d_ff+1, d_model) = [w2 ; b2]."""
    d_model = w1p_ref.shape[0] - 1
    d_ff = w2p_ref.shape[0] - 1

    x = x_ref[...]

    # linear_1 + ReLU  (dropout == identity in eval mode)
    w1 = w1p_ref[:d_model, :]          # static slice of resident VMEM buffer
    b1 = w1p_ref[d_model:, :]          # (1, d_ff) row -> sublane broadcast
    h = jnp.dot(x, w1, preferred_element_type=jnp.float32) + b1
    h = jnp.maximum(h, 0.0)

    # linear_2
    w2 = w2p_ref[:d_ff, :]
    b2 = w2p_ref[d_ff:, :]
    y = jnp.dot(h, w2, preferred_element_type=jnp.float32) + b2
    o_ref[...] = y.astype(o_ref.dtype)


def _cost_estimate(m, d_model, d_ff, itemsize):
    flops = 4 * m * d_model * d_ff  # two matmuls, 2*M*K*N each
    bytes_accessed = itemsize * (
        m * d_model                      # x
        + (d_model + 1) * d_ff           # packed w1|b1
        + (d_ff + 1) * d_model           # packed w2|b2
        + m * d_model                    # out
    )
    return pl.CostEstimate(flops=flops, transcendentals=0,
                           bytes_accessed=bytes_accessed)


def feed_forward_block(x, params, *, tile_m=256):
    """x: (..., d_model) float32. Returns same shape.

    Small M  -> single pallas_call (grid=()), everything resident in VMEM.
    Large M  -> (M//tile_m,) "parallel" grid: weights resident, x/out streamed,
                work shards across both v7x TensorCores (no-op on v5e/v6e).
    """
    orig_shape = x.shape
    d_model = orig_shape[-1]
    w1p, w2p = params["w1p"], params["w2p"]
    d_ff = w1p.shape[-1]

    x2d = x.reshape(-1, d_model)                       # (M, d_model)
    m = x2d.shape[0]
    cost = _cost_estimate(m, d_model, d_ff, x.dtype.itemsize)

    if m <= tile_m:
        # Latency-bound regime: one invocation, no grid, 3 input + 1 output DMA.
        vmem = pl.BlockSpec(memory_space=pltpu.MemorySpace.VMEM)
        out2d = pl.pallas_call(
            ffn_kernel,
            out_shape=jax.ShapeDtypeStruct((m, d_model), x.dtype),
            in_specs=[vmem, vmem, vmem],
            out_specs=vmem,
            cost_estimate=cost,
        )(x2d, w1p, w2p)
    else:
        # Scalable path: tile the row dimension, keep weights resident.
        n_tiles = pl.cdiv(m, tile_m)
        m_pad = n_tiles * tile_m
        if m_pad != m:
            x2d = jnp.pad(x2d, ((0, m_pad - m), (0, 0)))
        out2d = pl.pallas_call(
            ffn_kernel,
            out_shape=jax.ShapeDtypeStruct((m_pad, d_model), x.dtype),
            grid=(n_tiles,),
            in_specs=[
                pl.BlockSpec((tile_m, d_model), lambda i: (i, 0)),
                pl.BlockSpec((d_model + 1, d_ff), lambda i: (0, 0)),
                pl.BlockSpec((d_ff + 1, d_model), lambda i: (0, 0)),
            ],
            out_specs=pl.BlockSpec((tile_m, d_model), lambda i: (i, 0)),
            compiler_params=pltpu.CompilerParams(
                dimension_semantics=("parallel",)),
            cost_estimate=cost,
        )(x2d, w1p, w2p)
        if m_pad != m:
            out2d = out2d[:m]

    return out2d.reshape(orig_shape)


def feed_forward_reference(x, params):
    """Pure-JAX reference with identical math (torch eval-mode semantics)."""
    h = jnp.maximum(x @ params["w1"] + params["b1"], 0.0)
    return h @ params["w2"] + params["b2"]


def init_params(key):
    keys = jax.random.split(key, 4)
    s = 0.1
    w1 = s * jax.random.normal(keys[0], (D_MODEL, D_FF), jnp.float32)
    b1 = s * jax.random.normal(keys[1], (1, D_FF), jnp.float32)
    w2 = s * jax.random.normal(keys[2], (D_FF, D_MODEL), jnp.float32)
    b2 = s * jax.random.normal(keys[3], (1, D_MODEL), jnp.float32)
    return {
        "w1": w1, "b1": b1, "w2": w2, "b2": b2,
        # Packed once at init: saves two DMA descriptors per kernel call.
        "w1p": jnp.concatenate([w1, b1], axis=0),      # (d_model+1, d_ff)
        "w2p": jnp.concatenate([w2, b2], axis=0),      # (d_ff+1, d_model)
    }


if __name__ == "__main__":
    root = jax.random.PRNGKey(0)
    k_params, k_x, k_big = jax.random.split(root, 3)
    params = init_params(k_params)

    # Spec-sized input: (batch=2, seq=8, d_model=32) -> single-call path.
    x = jax.random.normal(k_x, (BATCH, SEQ, D_MODEL), jnp.float32)
    out = feed_forward_block(x, params)
    jax.block_until_ready(out)
    ref = feed_forward_reference(x, params)
    assert out.shape == (BATCH, SEQ, D_MODEL)
    assert jnp.allclose(out, ref, atol=1e-4, rtol=1e-4), "small-path mismatch"

    # Larger batch exercises the tiled "parallel" grid path (scalability check).
    x_big = jax.random.normal(k_big, (4, 256, D_MODEL), jnp.float32)  # M = 1024
    out_big = feed_forward_block(x_big, params, tile_m=256)
    jax.block_until_ready(out_big)
    ref_big = feed_forward_reference(x_big, params)
    assert out_big.shape == x_big.shape
    assert jnp.allclose(out_big, ref_big, atol=1e-4, rtol=1e-4), "tiled-path mismatch"

    print("KERNEL_OK")
</pallas_src>

<mosaic_0001>
module attributes {stable_mosaic.version = 11 : i64} {
  func.func @ffn_kernel(%arg0: memref<16x32xf32, #tpu.memory_space<vmem>>, %arg1: memref<33x64xf32, #tpu.memory_space<vmem>>, %arg2: memref<65x32xf32, #tpu.memory_space<vmem>>, %arg3: memref<16x32xf32, #tpu.memory_space<vmem>>) attributes {dimension_semantics = [], scalar_prefetch = 0 : i64, scratch_operands = 0 : i64, tpu.core_type = #tpu.core_type<tc>} {
    %c0 = arith.constant 0 : index
    %c0_0 = arith.constant 0 : index
    %0 = vector.load %arg0[%c0, %c0_0] : memref<16x32xf32, #tpu.memory_space<vmem>>, vector<16x32xf32>
    %c0_1 = arith.constant 0 : index
    %c0_2 = arith.constant 0 : index
    %1 = vector.load %arg1[%c0_1, %c0_2] : memref<33x64xf32, #tpu.memory_space<vmem>>, vector<32x64xf32>
    %c32 = arith.constant 32 : index
    %c0_3 = arith.constant 0 : index
    %2 = vector.load %arg1[%c32, %c0_3] : memref<33x64xf32, #tpu.memory_space<vmem>>, vector<1x64xf32>
    %cst = arith.constant dense<0.000000e+00> : vector<16x64xf32>
    %3 = tpu.matmul %0, %1, %cst {dimension_numbers = #tpu.dot_dimension_numbers<[1], [0], [0], [1], [0, 0, 1, 1], [], []>} : vector<16x32xf32>, vector<32x64xf32>, vector<16x64xf32> -> vector<16x64xf32>
    %4 = vector.broadcast %2 : vector<1x64xf32> to vector<16x64xf32>
    %5 = arith.addf %3, %4 : vector<16x64xf32>
    %cst_4 = arith.constant 0.000000e+00 : f32
    %6 = vector.broadcast %cst_4 : f32 to vector<16x64xf32>
    %7 = arith.maximumf %5, %6 : vector<16x64xf32>
    %c0_5 = arith.constant 0 : index
    %c0_6 = arith.constant 0 : index
    %8 = vector.load %arg2[%c0_5, %c0_6] : memref<65x32xf32, #tpu.memory_space<vmem>>, vector<64x32xf32>
    %c64 = arith.constant 64 : index
    %c0_7 = arith.constant 0 : index
    %9 = vector.load %arg2[%c64, %c0_7] : memref<65x32xf32, #tpu.memory_space<vmem>>, vector<1x32xf32>
    %cst_8 = arith.constant dense<0.000000e+00> : vector<16x32xf32>
    %10 = tpu.matmul %7, %8, %cst_8 {dimension_numbers = #tpu.dot_dimension_numbers<[1], [0], [0], [1], [0, 0, 1, 1], [], []>} : vector<16x64xf32>, vector<64x32xf32>, vector<16x32xf32> -> vector<16x32xf32>
    %11 = vector.broadcast %9 : vector<1x32xf32> to vector<16x32xf32>
    %12 = arith.addf %10, %11 : vector<16x32xf32>
    %c0_9 = arith.constant 0 : index
    %c0_10 = arith.constant 0 : index
    %13 = vector.load %arg3[%c0_9, %c0_10] : memref<16x32xf32, #tpu.memory_space<vmem>>, vector<16x32xf32>
    tpu.vector_store %arg3[%c0_9, %c0_10], %12 {strides = array<i32>} : memref<16x32xf32, #tpu.memory_space<vmem>>, vector<16x32xf32>,
    return
  }
}

</mosaic_0001>

<bundles_post_ra>
// kernel: tpu_custom_call.1
= control target key start
LH: loop header
LB: loop body
LE: loop exit
PB: predicated region body
PF: predicated region fallthrough
CT: control target
= control target key end

     0   :  { %vm26_vm0 = vcmask 261120   ;;  %s378_s0 = inlined_call_operand.vmem [shape: f32[16,32], index: 0, kind: input, shape index: {}]   ;;  %s379_s1 = inlined_call_operand.vmem [shape: f32[33,64], index: 1, kind: input, shape index: {}]   ;;  %s380_s2 = inlined_call_operand.vmem [shape: f32[65,32], index: 2, kind: input, shape index: {}]   ;;  %s381_s3 = inlined_call_operand.hbm [shape: f32[16,32], index: 3, kind: output, shape index: {}]  }
   0x1   :  { %v20_v0 = vld [vmem:[%s379_s1 + $0x18] sm:$0xff]  ;;  %v19_v1 = vld [vmem:[%s379_s1 + $0x10] sm:$0xff]  ;;  %v15_v2 = vld [vmem:[%s378_s0] sm:$0xff] }
   0x2   :  { %245 = vmatprep.subr.mxu0 %v20_v0  ;;  %v18_v3 = vld [vmem:[%s379_s1 + $0x8] sm:$0xff]  ;;  %253 = vmatprep.mubr.msk.f32.mxu0 %vm26_vm0, %v15_v2  ;;  %v117_v4 = vld [vmem:[%s380_s2 + $0x38] sm:$0xff]  ;;  %v116_v5 = vld [vmem:[%s380_s2 + $0x30] sm:$0xff] }
   0x3   :  { %246 = vmatpush3.msra.mxu0 %v20_v0  ;;  %256 = vmatprep.subr.mxu1 %v117_v4 }
   0x4   :  { %247 = vmatprep.subr.mxu0 %v19_v1 }
   0x5   :  { %8 = vsyncpa [#allocation3], 0  ;;  %248 = vmatpush3.msra.mxu0 %v19_v1  ;;  %v17_v6 = vld [vmem:[%s379_s1] sm:$0xff]  ;;  %257 = vmatpush3.msra.mxu1 %v117_v4  ;;  %v115_v7 = vld [vmem:[%s380_s2 + $0x28] sm:$0xff]  ;;  %vm123_vm1 = vcmask 523264   ;;  %s300_s16 = smov [#allocation2]  }
   0x6   :  { %249 = vmatprep.subr.mxu0 %v18_v3  ;;  %258 = vmatprep.subr.mxu1 %v116_v5  ;;  %v16_v8 = vld [vmem:[%s378_s0 + $0x8] sm:$0xff]  ;;  %v114_v9 = vld [vmem:[%s380_s2 + $0x20] sm:$0xff]  ;;  %v113_v10 = vld [vmem:[%s380_s2 + $0x18] sm:$0xff]  ;;  %s212_s17 = sshll.u32 %s300_s16, 4  ;;  %s213_s17 = int_to_ptr.vmem [resolvable:$true] %s212_s17 }
   0x7   :  { %250 = vmatpush3.msra.mxu0 %v18_v3  ;;  %259 = vmatpush3.msra.mxu1 %v116_v5  ;;  %v112_v11 = vld [vmem:[%s380_s2 + $0x10] sm:$0xff]  ;;  %v111_v12 = vld [vmem:[%s380_s2 + $0x8] sm:$0xff]  ;;  %v110_v13 = vld [vmem:[%s380_s2] sm:$0xff]  ;;  %p283_p1 = scmp.lt.s32.totalorder %s213_s17, %s213_s17 }
   0x8   :  { %251 = vmatprep.subr.mxu0 %v17_v6  ;;  %260 = vmatprep.subr.mxu1 %v115_v7  ;;  %v223_v14 = vld [vmem:[%s379_s1 + $0x20] ss:$0 sm:$0xff]  ;;  %s278_s1 = scalar_lea.vmem %s213_s17, 256 }
   0x9   :  { %252 = vmatpush3.msra.mxu0 %v17_v6  ;;  %261 = vmatpush3.msra.mxu1 %v115_v7  ;;  %v226_v21 = vld [vmem:[%s380_s2 + $0x40] ss:$0 sm:$0xff]  ;;  %p279_p0 = scmp.ne.s32.totalorder %s213_s17, %s278_s1  ;;  %p284_p2 = scmp.lt.s32.totalorder %s278_s1, %s278_s1 }
   0xa   :  { %254 = vmatmul.mubr.msk.f32.vlgmr.msra.gmra.mxu0 %vm26_vm0, %v16_v8  ;;  %262 = vmatprep.subr.mxu1 %v114_v9 }
   0xb   :  { %263 = vmatpush3.msra.mxu1 %v114_v9  ;;  %p285_p3 = por %p284_p2, %p283_p1 }
   0xc   :  { %264 = vmatprep.subr.mxu1 %v113_v10 }
   0xd   :  { %265 = vmatpush3.msra.mxu1 %v113_v10  ;;  %p286_p4 = pnand %p285_p3, %p279_p0 }
   0xe   :  { %266 = vmatprep.subr.mxu1 %v112_v11 }
   0xf   :  { %267 = vmatpush3.msra.mxu1 %v112_v11 }
  0x10   :  { %268 = vmatprep.subr.mxu1 %v111_v12 }
  0x11   :  { %269 = vmatpush3.msra.mxu1 %v111_v12 }
  0x12   :  { %270 = vmatprep.subr.mxu1 %v110_v13 }
  0x13   :  { %271 = vmatpush3.msra.mxu1 %v110_v13 }
  0xca   :  { %v255_v15 = vpop.f32.mrf.mxu0 }
  0xcb   :  { %v105_v16 = vadd.f32 %v255_v15, %v223_v14 }
  0xcc   :  { %v99_v17 = vpop.f32.mrf.mxu0 }
  0xcd   :  { %v100_v18 = vadd.f32 %v223_v14, %v99_v17  ;;  %v109_v20 = vmax.f32 %v105_v16, 0.0 }
  0xcf   :  { %v108_v19 = vmax.f32 %v100_v18, 0.0 }
  0xd1   :  { %272 = vmatprep.mubr.msk.f32.mxu1 %vm123_vm1, %v108_v19 }
  0xd2   :  { %273 = vmatmul.mubr.msk.f32.vlgmr.msra.gmra.mxu1 %vm123_vm1, %v109_v20 }
 0x192   :  { %v274_v22 = vpop.f32.mrf.mxu1 }
 0x193   :  { %v202_v23 = vadd.f32 %v274_v22, %v226_v21 }
 0x194   :  { %v196_v24 = vpop.f32.mrf.mxu1 }
 0x195   :  { %206 = vst.msk [vmem:[#allocation2 + $0x8] sm:$0xff] %vm26_vm0, %v202_v23  ;;  %v197_v25 = vadd.f32 %v226_v21, %v196_v24 }
 0x197   :  { %205 = vst.msk [vmem:[#allocation2] sm:$0xff] %vm26_vm0, %v197_v25 }
 0x198   :  { %289 = shalt.err (!%p286_p4)
}
 0x199   :  { %s301_s18 = smov 128   ;;  %s302_s2 = smov 8  }
 0x19a   :  { %218 = dma.vmem_to_hbm [thread:$0]  %s213_s17, 256, %s381_s3, [#allocation3], %s301_s18, %s301_s18, %s302_s2  }
 0x19b   :  { %298 = dma.done.wait [#allocation3], 256  }
 0x19c   :  { %299 = vsyncadd [#allocation3], 4294967040 }
 0x19d   :  { %222 = vsyncpa [#allocation3], 1 }

</bundles_post_ra>
